<compile_context>
chip_gen: v7x
topology: tpu7x:2x2x1
jax: 0.10.0
libtpu: 0.0.40
codegen_flags: <defaults>
</compile_context>

<pallas_src>
import jax
import jax.numpy as jnp
from jax.experimental import pallas as pl
from jax.experimental.pallas import tpu as pltpu


def _conv_matmul_kernel(patch_ref, w_ref, b_ref, o_ref):
    """One (conv, spatial-tile) grid point: 3x3 stride-2 conv as a single matmul.

    patch_ref: (1, 9*C, TL)   im2col patch; rows ordered (kh, kw, cin),
                              lanes are the flat (n, ho, wo) spatial axis
    w_ref:     (1, C, 9*C)    channels-first packed weights
    b_ref:     (1, C, 1)      bias
    o_ref:     (1, C, TL)     channels-first, spatially-flat output tile
    """
    # Single MXU push, f32 accumulation.  No transposes / concats in-kernel.
    acc = jnp.dot(w_ref[0], patch_ref[0], preferred_element_type=jnp.float32)
    acc = acc + b_ref[0]                      # (C, 1) broadcast over lanes
    o_ref[...] = acc[None].astype(o_ref.dtype)


def downsample_pair(x, x_prev, w_x, b_x, w_xp, b_xp, *, mxu_dtype=None):
    """Fused conv_x / conv_x_prev:  Conv2d(C, C, (3,3), (2,2), (1,1)) for both.

    x, x_prev:    (N, C, H, W)   PyTorch NCHW layout
    w_x, w_xp:    (C, C, 3, 3)   PyTorch OIHW layout
    b_x, b_xp:    (C,)
    mxu_dtype:    e.g. jnp.bfloat16 on v6e/v7x at production C (f32 accumulate)
    returns:      (y, y_prev)    each (N, C, Ho, Wo)
    """
    N, C, H, W = x.shape
    Ho = (H + 2 - 3) // 2 + 1
    Wo = (W + 2 - 3) // 2 + 1

    # ---- XLA-side producer (all of this fuses; zero FLOPs, pure relayout) ----
    # Stack the two convs on a leading axis -> one fused pallas_call.
    xs = jnp.stack([x, x_prev], axis=0)                          # (2, N, C, H, W)
    xp = jnp.pad(xs, ((0, 0), (0, 0), (0, 0), (1, 1), (1, 1)))   # (2, N, C, Hp, Wp)

    # Space-to-depth / im2col hoisted out of the kernel: strided tap gathers are
    # done by XLA here instead of becoming cross-lane shuffles inside Mosaic.
    taps = []
    for kh in range(3):
        for kw in range(3):
            taps.append(jax.lax.slice(
                xp,
                (0, 0, 0, kh, kw),
                (2, N, C, kh + 2 * Ho - 1, kw + 2 * Wo - 1),
                (1, 1, 1, 2, 2)))                                # (2, N, C, Ho, Wo)
    patch = jnp.stack(taps, axis=0)                              # (9, 2, N, C, Ho, Wo)
    patch = jnp.transpose(patch, (1, 0, 3, 2, 4, 5))             # (2, 9, C, N, Ho, Wo)
    L = N * Ho * Wo
    patch = patch.reshape(2, 9 * C, L)                           # rows=(kh,kw,cin)

    # Lane padding / tiling: lane axis is the flat spatial axis, padded to a
    # multiple of the lane tile so every store is unmasked and lane-dense.
    lane = 128
    Lp = -(-L // lane) * lane
    TL = min(Lp, 512)          # 512-wide tiles keep production blocks VMEM-safe
    Lp = -(-Lp // TL) * TL
    if Lp != L:
        patch = jnp.pad(patch, ((0, 0), (0, 0), (0, Lp - L)))

    # Weights: OIHW -> (Cout, kh, kw, Cin) -> (Cout, 9*Cin); matches patch rows.
    def pack_w(w):
        return jnp.transpose(w, (0, 2, 3, 1)).reshape(C, 9 * C)

    ws = jnp.stack([pack_w(w_x), pack_w(w_xp)], axis=0)          # (2, C, 9C)
    bs = jnp.stack([b_x, b_xp], axis=0).reshape(2, C, 1)         # (2, C, 1)

    if mxu_dtype is not None:
        # bf16 MXU inputs on v6e/v7x: 2x MXU rate + half the DMA/VMEM bytes,
        # accumulation stays f32 inside the kernel.
        patch = patch.astype(mxu_dtype)
        ws = ws.astype(mxu_dtype)

    # NOTE: at production C (>=128) replace the materialized im2col patch with
    # per-tap (C,C)@(C,HW) accumulation into a VMEM scratch (weights resident),
    # which avoids the 9x HBM read blowup.  Unnecessary at these shapes.
    S = Lp // TL
    out = pl.pallas_call(
        _conv_matmul_kernel,
        out_shape=jax.ShapeDtypeStruct((2, C, Lp), x.dtype),
        grid=(2, S),
        in_specs=[
            pl.BlockSpec((1, 9 * C, TL), lambda g, s: (g, 0, s)),
            pl.BlockSpec((1, C, 9 * C), lambda g, s: (g, 0, 0)),
            pl.BlockSpec((1, C, 1), lambda g, s: (g, 0, 0)),
        ],
        out_specs=pl.BlockSpec((1, C, TL), lambda g, s: (g, 0, s)),
        compiler_params=pltpu.CompilerParams(
            dimension_semantics=("parallel", "parallel")),
    )(patch, ws, bs)

    # (2, C, Lp) -> (2, N, C, Ho, Wo); tiny consumer-side relayout, fuses in XLA.
    out = out[:, :, :L].reshape(2, C, N, Ho, Wo)
    out = jnp.transpose(out, (0, 2, 1, 3, 4))
    return out[0], out[1]


class DownsamplePallas:
    """JAX/Pallas equivalent of the PyTorch Downsample module."""

    def __init__(self, n_channels, key, mxu_dtype=None):
        C = n_channels
        kw, kb = jax.random.split(key)
        # conv_x: PyTorch-style uniform init.
        fan_in = C * 3 * 3
        bound = 1.0 / (fan_in ** 0.5)
        self.w_x = jax.random.uniform(kw, (C, C, 3, 3), jnp.float32,
                                      minval=-bound, maxval=bound)
        self.b_x = jax.random.uniform(kb, (C,), jnp.float32,
                                      minval=-bound, maxval=bound)
        # conv_x_prev: weights and bias filled with zeros (as in __init__).
        self.w_xp = jnp.zeros((C, C, 3, 3), jnp.float32)
        self.b_xp = jnp.zeros((C,), jnp.float32)
        self.mxu_dtype = mxu_dtype

    def __call__(self, x, x_prev, x_minmax, r, t):
        del t, r, x_minmax  # unused, matching the PyTorch forward
        return downsample_pair(x, x_prev, self.w_x, self.b_x,
                               self.w_xp, self.b_xp, mxu_dtype=self.mxu_dtype)


if __name__ == "__main__":
    key = jax.random.PRNGKey(0)
    k_mod, k_x, k_xp, k_r, k_t = jax.random.split(key, 5)

    N, C, H, W = 2, 4, 16, 16
    x = jax.random.normal(k_x, (N, C, H, W), jnp.float32)
    x_prev = jax.random.normal(k_xp, (N, C, H, W), jnp.float32)
    x_minmax = jnp.zeros((N, 2), jnp.float32)          # ignored by forward
    r = jax.random.normal(k_r, (N,), jnp.float32)      # ignored by forward
    t = jax.random.normal(k_t, (N,), jnp.float32)      # ignored by forward

    mod = DownsamplePallas(C, k_mod)
    y, y_prev = mod(x, x_prev, x_minmax, r, t)
    y = jax.block_until_ready(y)
    y_prev = jax.block_until_ready(y_prev)

    # Sanity check against XLA's reference convolution.
    ref_y = jax.lax.conv_general_dilated(
        x, mod.w_x, window_strides=(2, 2), padding=((1, 1), (1, 1)),
        dimension_numbers=("NCHW", "OIHW", "NCHW"),
    ) + mod.b_x.reshape(1, C, 1, 1)

    assert y.shape == (N, C, H // 2, W // 2)
    assert y_prev.shape == (N, C, H // 2, W // 2)
    assert jnp.allclose(y, ref_y, atol=1e-4), "conv_x mismatch vs reference"
    assert jnp.allclose(y_prev, jnp.zeros_like(y_prev), atol=1e-6), \
        "conv_x_prev (zero-init) should output all zeros"

    print("KERNEL_OK")
</pallas_src>

<mosaic_0001>
module attributes {stable_mosaic.version = 11 : i64} {
  func.func @_conv_matmul_kernel(%arg0: i32, %arg1: i32, %arg2: memref<1x36x128xf32, #tpu.memory_space<vmem>>, %arg3: memref<1x4x36xf32, #tpu.memory_space<vmem>>, %arg4: memref<1x4x1xf32, #tpu.memory_space<vmem>>, %arg5: memref<1x4x128xf32, #tpu.memory_space<vmem>>) attributes {dimension_semantics = [#tpu.dimension_semantics<parallel>, #tpu.dimension_semantics<parallel>], iteration_bounds = array<i64: 2, 1>, scalar_prefetch = 0 : i64, scratch_operands = 0 : i64, tpu.core_type = #tpu.core_type<tc>, window_params = [{transform_indices = @transform_0, window_bounds = array<i64: 1, 36, 128>}, {transform_indices = @transform_1, window_bounds = array<i64: 1, 4, 36>}, {transform_indices = @transform_2, window_bounds = array<i64: 1, 4, 1>}, {transform_indices = @transform_3, window_bounds = array<i64: 1, 4, 128>}]} {
    %c0 = arith.constant 0 : index
    %c0_0 = arith.constant 0 : index
    %c0_1 = arith.constant 0 : index
    %0 = vector.load %arg3[%c0, %c0_0, %c0_1] : memref<1x4x36xf32, #tpu.memory_space<vmem>>, vector<1x4x36xf32>
    %1 = vector.shape_cast %0 : vector<1x4x36xf32> to vector<4x36xf32>
    %c0_2 = arith.constant 0 : index
    %c0_3 = arith.constant 0 : index
    %c0_4 = arith.constant 0 : index
    %2 = vector.load %arg2[%c0_2, %c0_3, %c0_4] : memref<1x36x128xf32, #tpu.memory_space<vmem>>, vector<1x36x128xf32>
    %3 = vector.shape_cast %2 : vector<1x36x128xf32> to vector<36x128xf32>
    %cst = arith.constant dense<0.000000e+00> : vector<4x128xf32>
    %4 = tpu.matmul %1, %3, %cst {dimension_numbers = #tpu.dot_dimension_numbers<[1], [0], [0], [1], [0, 0, 1, 1], [], []>} : vector<4x36xf32>, vector<36x128xf32>, vector<4x128xf32> -> vector<4x128xf32>
    %c0_5 = arith.constant 0 : index
    %c0_6 = arith.constant 0 : index
    %c0_7 = arith.constant 0 : index
    %5 = vector.load %arg4[%c0_5, %c0_6, %c0_7] : memref<1x4x1xf32, #tpu.memory_space<vmem>>, vector<1x4x1xf32>
    %6 = vector.shape_cast %5 : vector<1x4x1xf32> to vector<4x1xf32>
    %7 = vector.broadcast %6 : vector<4x1xf32> to vector<4x128xf32>
    %8 = arith.addf %4, %7 : vector<4x128xf32>
    %9 = vector.shape_cast %8 : vector<4x128xf32> to vector<1x4x128xf32>
    %c0_8 = arith.constant 0 : index
    %c0_9 = arith.constant 0 : index
    %c0_10 = arith.constant 0 : index
    %10 = vector.load %arg5[%c0_8, %c0_9, %c0_10] : memref<1x4x128xf32, #tpu.memory_space<vmem>>, vector<1x4x128xf32>
    tpu.vector_store %arg5[%c0_8, %c0_9, %c0_10], %9 {strides = array<i32>} : memref<1x4x128xf32, #tpu.memory_space<vmem>>, vector<1x4x128xf32>,
    return
  }
  func.func @transform_0(%arg0: i32, %arg1: i32) -> (i32, i32, i32) {
    %c0_i32 = arith.constant 0 : i32
    %c0_i32_0 = arith.constant 0 : i32
    return %arg0, %c0_i32, %arg1 : i32, i32, i32
  }
  func.func @transform_1(%arg0: i32, %arg1: i32) -> (i32, i32, i32) {
    %c0_i32 = arith.constant 0 : i32
    %c0_i32_0 = arith.constant 0 : i32
    %c0_i32_1 = arith.constant 0 : i32
    return %arg0, %c0_i32, %c0_i32_0 : i32, i32, i32
  }
  func.func @transform_2(%arg0: i32, %arg1: i32) -> (i32, i32, i32) {
    %c0_i32 = arith.constant 0 : i32
    %c0_i32_0 = arith.constant 0 : i32
    %c0_i32_1 = arith.constant 0 : i32
    return %arg0, %c0_i32, %c0_i32_0 : i32, i32, i32
  }
  func.func @transform_3(%arg0: i32, %arg1: i32) -> (i32, i32, i32) {
    %c0_i32 = arith.constant 0 : i32
    %c0_i32_0 = arith.constant 0 : i32
    return %arg0, %c0_i32, %arg1 : i32, i32, i32
  }
}

</mosaic_0001>

<bundles_post_ra>
// kernel: tpu_custom_call.1
= control target key start
LH: loop header
LB: loop body
LE: loop exit
PB: predicated region body
PF: predicated region fallthrough
CT: control target
= control target key end

     0   :  { %8 = vsyncpa [#allocation3], 0  ;;  %s756_s0 = inlined_call_operand.vmem [shape: f32[2,36,128], index: 0, kind: input, shape index: {}]   ;;  %s757_s1 = inlined_call_operand.vmem [shape: f32[2,4,36], index: 1, kind: input, shape index: {}]   ;;  %s758_s2 = inlined_call_operand.vmem [shape: f32[2,4,1], index: 2, kind: input, shape index: {}]   ;;  %s759_s3 = inlined_call_operand.hbm [shape: f32[2,4,128], index: 3, kind: output, shape index: {}]  }
   0x1   :  { %10 = vsyncpa [#allocation3 + $0x1], 0  ;;  %s638_s12 = smov 0   ;;  %s640_s13 = smov 0  }
   0x2   :  { %s642_s14 = smov 0   ;;  %s644_s15 = smov 0  }
   0x3   :  { %s646_s16 = smov 0   ;;  %s648_s17 = smov 0  }
   0x4 LB: > { %s432_s18 = sadd.s32 4294967295, %s611_s17   ;;  %s433_s19 = sadd.s32 4294967294, %s611_s17   ;;  %s611_s17 = sphi %s648_s17, %s16_s17   ;;  %s607_s16 = sphi %s646_s16, %s766_s16   ;;  %s603_s15 = sphi %s644_s15, %s765_s15   ;;  %s599_s14 = sphi %s642_s14, %s764_s14   ;;  %s595_s13 = sphi %s640_s13, %s763_s13   ;;  %s591_s12 = sphi %s638_s12, %s762_s12  }
   0x5   : > { %s28_s20 = sadd.s32 1, %s607_s16  ;;  %s117_s21 = sadd.s32 1, %s599_s14 }
   0x6   : > { %p30_p0 = scmp.ge.s32.totalorder %s28_s20, 2  ;;  %p127_p1 = scmp.ne.s32.totalorder %s599_s14, %s595_s13 }
   0x7   : > { %p128_p2 = scmp.eq.s32.totalorder %s432_s18, 1  ;;  %p133_p3 = scmp.ne.s32.totalorder %s595_s13, %s591_s12 }
   0x8   : > { %s768_s20 = smov (%p30_p0, %s28_s20), 0  ;;  %p134_p5 = scmp.eq.s32.totalorder %s433_s19, 1 }
   0x9   : > { %p678_p4 = por %p128_p2, %p127_p1  ;;  %s112_s23 = ssub.s32 %s607_s16, %s768_s20 }
   0xa   : > { %p436_p6 = scmp.ge.s32.totalorder %s611_s17, 1  ;;  %p115_p7 = scmp.eq.s32.totalorder %s112_s23, 0 }
   0xb   : > { %p685_p8 = por %p134_p5, %p133_p3  ;;  %p177_p9 = scmp.lt.s32.totalorder %s611_s17, 3 }
   0xc   : > { %s691_s25 = scalar_select %p115_p7, %s599_s14, %s117_s21  }
   0xd   : > { %p178_p10 = pnand %p436_p6, %p177_p9 }
   0xe   : > { %p212_p11 = scmp.lt.s32.totalorder (!%p178_p10), %s603_s15, 1  ;;  %v613_v0 = vmov (!%p178_p10), 0.0|0.0   ;;  %vm614_vm0 = vmmov (!%p178_p10), 0   ;;  %v615_v1 = vmov (!%p178_p10), 0.0   ;;  %v616_v2 = vmov (!%p178_p10), 0   ;;  %s209_s11 = sand.u32 (!%p178_p10), 1, %s595_s13  }
   0xf   : > { %181 = sbr.rel (%p178_p10) target bundleno = 267 (0x10b), region = 32  ;;  %466 = vmatprep.subr.bf16.mxu0 (!%p178_p10), %v613_v0  ;;  %463 = vmatprep.mubr.msk.f32.mxu0 (!%p178_p10), %vm614_vm0, %v615_v1  ;;  %vm244_vm1 = vcmask (!%p178_p10), 1043456   ;;  %vm240_vm2 = vcmask (!%p178_p10), 293888   ;;  %s437_s18 = sshll.u32 (!%p178_p10), %s209_s11, 2 }
  0x10   : > { %532 = vset.pattern.permute.xlu0 (!%p178_p10), %v616_v2  ;;  %s444_s19 = sshll.u32 (!%p178_p10), %s603_s15, 6  ;;  %s211_s21 = scalar_lea.vmem (!%p178_p10), [#allocation2], %s437_s18 }
  0x11   : > { %s334_s23 = sshll.u32 (!%p178_p10), %s211_s21, 4  ;;  %s320_s29 = scalar_lea.sflag (!%p178_p10), [#allocation3], %s209_s11  ;;  %s711_s23 = int_to_ptr.vmem [resolvable:$true] %s334_s23 }
  0x12   : > { %s533_s30 = scalar_lea.vmem (!%p178_p10), %s711_s23, 64 }
  0x13   : > { %p534_p12 = scmp.ne.s32.totalorder (!%p178_p10), %s711_s23, %s533_s30 }
  0x15   : > { %p535_p13 = pnand (!%p178_p10), %p534_p12, %p678_p4 }
  0x16   : > { %s213_s26 = scalar_select %p212_p11, %s603_s15, 1 }
  0x17   : > { %p536_p0 = pneg %p535_p13  ;;  %s617_s15 = smov [#allocation2]  }
  0x18   : > { %s472_s27 = smul.u32 40, %s213_s26  ;;  %s439_s28 = sshll.u32 %s213_s26, 2 }
  0x19   : > { %s227_s4 = scalar_lea.vmem %s758_s2, %s439_s28  ;;  %s223_s10 = scalar_lea.vmem %s757_s1, %s439_s28 }
  0x1a   : > { %s219_s7 = scalar_lea.vmem %s756_s0, %s472_s27  ;;  %v234_v3 = vld [vmem:[%s227_s4] sm:$0xf]  ;;  %s709_s28 = scalar_lea.hbm %s759_s3, %s444_s19 }
  0x1b   : > { %v229_v4 = vld [vmem:[%s219_s7] sm:$0xff]  ;;  %v230_v5 = vld [vmem:[%s219_s7 + $0x8] sm:$0xff]  ;;  %v231_v6 = vld [vmem:[%s219_s7 + $0x10] sm:$0xff]  ;;  %237 = vperm.xlu0 %532, %v234_v3   ;;  %s537_s4 = sshll.u32 %s617_s15, 4  ;;  %s538_s4 = int_to_ptr.vmem [resolvable:$false] %s537_s4 }
  0x1c   : > { %v467_v7 = vpack.c.bf16 %v230_v5, %v229_v4  ;;  %v232_v8 = vld [vmem:[%s219_s7 + $0x18] sm:$0xff]  ;;  %v233_v10 = vld [vmem:[%s219_s7 + $0x20] sm:$0xf]  ;;  %s539_s5 = scalar_lea.vmem %s538_s4, 128  ;;  %p540_p1 = scmp.lt.s32.totalorder %s711_s23, %s538_s4 }
  0x1d   : > { %v470_v9 = vpack.c.bf16 %v232_v8, %v231_v6  ;;  %v228_v11 = vld [vmem:[%s223_s10] sm:$0xf]  ;;  %p541_p2 = scmp.lt.s32.totalorder %s539_s5, %s533_s30 }
  0x1e   : > { %468 = vmatpush3.bf16.msra.mxu0 %v467_v7 }
  0x1f   : > { %469 = vmatprep.subr.bf16.mxu0 %v613_v0  ;;  %p542_p3 = por %p541_p2, %p540_p1 }
  0x21   : > { %p543_p5 = pnand %p542_p3, %p536_p0 }
  0x22   : > { %471 = vmatpush3.bf16.msra.mxu0 %v470_v9 }
  0x23   : > { %461 = vmatprep.subr.mxu0 %v615_v1 }
  0x26   : > { %462 = vmatpush3.msk.msra.mxu0 %vm244_vm1, %v233_v10 }
  0x27   : > { %464 = vmatmul.mubr.msk.f32.vlgmr.msra.gmra.mrb[0].mxu0 %vm240_vm2, %v228_v11 }
  0x9a   : > { %v238_v12 = vpop.permute.xlu0 %237 }
  0xfa   : > { %v314_v13 = vpop.f32.mrb[0].mxu0 }
  0xfb   : > { %v315_v14 = vadd.f32 %v314_v13, %v238_v12  ;;  %v465_v15 = vpop.f32.mrb[1].mxu0 }
  0xfd   : > { %318 = vst [vmem:[%s211_s21] sm:$0xf] %v315_v14 }
  0xfe   : > { %546 = shalt.err (!%p543_p5)
}
  0xff   : > { %s547_s6 = scalar_lea.hbm %s709_s28, 64  ;;  %s551_s9 = scalar_lea.hbm %s759_s3, 128 }
 0x100   : > { %p548_p6 = scmp.ne.s32.totalorder %s709_s28, %s547_s6  ;;  %p552_p10 = scmp.lt.u32.totalorder %s709_s28, %s759_s3 }
 0x101   : > { %p553_p11 = scmp.lt.u32.totalorder %s551_s9, %s547_s6  ;;  %p555_p13 = scmp.lt.u32.totalorder %s547_s6, %s709_s28 }
 0x102   : > { %p549_p7 = pnand %p548_p6, %p678_p4 }
 0x103   : > { %p554_p12 = por %p553_p11, %p552_p10 }
 0x104   : > { %p550_p9 = pneg %p549_p7 }
 0x105   : > { %p556_p0 = por %p555_p13, %p554_p12 }
 0x107   : > { %p557_p1 = pnand %p556_p0, %p550_p9 }
 0x109   : > { %560 = shalt.err (!%p557_p1)
}
 0x10a   : > { %473 = dma.vmem_to_hbm [thread:$0]  (%p678_p4), %s711_s23, 64, %s709_s28, %s320_s29  }
 0x10b PF: > { %p479_p2 = scmp.ge.s32.totalorder %s611_s17, 2  ;;  %s346_s18 = sand.u32 1, %s591_s12  }
 0x10c   : > { %s347_s19 = scalar_lea.sflag [#allocation3], %s346_s18 }
 0x10d   : > { %p476_p3 = pnand %p479_p2, %p685_p8 }
 0x10f   : > { %586 = dma.done.wait (!%p476_p3), %s347_s19, 64  }
 0x110   : > { %588 = vsyncadd (!%p476_p3), %s347_s19, 4294967232  ;;  %s16_s17 = sadd.s32 1, %s611_s17   ;;  %s762_s12 = smov %s595_s13 }
 0x111   : > { %p13_p5 = scmp.ge.s32.totalorder %s16_s17, 4   ;;  %s763_s13 = smov %s599_s14 }
 0x112   : > { %s764_s14 = smov %s691_s25  ;;  %s765_s15 = smov %s607_s16 }
 0x113   : > { %s766_s16 = smov %s768_s20  ;;  %15 = sbr.rel (!%p13_p5) target bundleno = 4 (0x4), region = 73 }
 0x11a   :  { %352 = vsyncpa [#allocation3], 1 }
 0x11b   :  { %354 = vsyncpa [#allocation3 + $0x1], 1 }

</bundles_post_ra>
